<compile_context>
chip_gen: v7x
topology: tpu7x:2x2x1
jax: 0.10.0
libtpu: 0.0.40
codegen_flags: <defaults>
</compile_context>

<pallas_src>
import functools

import jax
import jax.numpy as jnp
from jax.experimental import pallas as pl
from jax.experimental.pallas import tpu as pltpu

VMEM_SPEC = pl.BlockSpec(memory_space=pltpu.MemorySpace.VMEM)
ANY_SPEC = pl.BlockSpec(memory_space=pl.ANY)


# ----------------------------------------------------------------------------- fused kernel

def _grngob_kernel(emb_ref, mat_hbm_ref,
                   w_emb_ref, w_nei_ref, w_g_ref, w_hu_ref, b_rzc_ref, b_u_ref,
                   w2_m_ref, w2_gu_ref, b2_rzc_ref, b2_u_ref,
                   geneh_out_ref, g_out_ref,
                   mat_vmem_ref, mat_sem_ref, *, layers):
    n, H = emb_ref.shape
    G = w2_gu_ref.shape[0]

    # Start the (largest) adjacency DMA immediately; wait only right before its first use
    # (layer 1) so layer-0 compute hides the HBM->VMEM copy.  Layer 0 never touches it.
    if layers > 1:
        mat_copy = pltpu.make_async_copy(mat_hbm_ref, mat_vmem_ref, mat_sem_ref)
        mat_copy.start()

    emb = emb_ref[...]                                            # [N, E]
    b_u = b_u_ref[...]                                            # [1, H]
    b2_u = b2_u_ref[...]                                          # [1, G]
    inv_n = 1.0 / n

    # gene_emb contribution to (r | z | c) gates is constant across layers — compute once.
    emb_proj = jnp.dot(emb, w_emb_ref[...],
                       preferred_element_type=jnp.float32) + b_rzc_ref[...]      # [N, 3H]

    # ---------------- layer 0: gene_h == 0 and g_h == 0 exactly ----------------
    r = jax.nn.sigmoid(emb_proj[:, :H])
    z = jax.nn.sigmoid(emb_proj[:, H:2 * H])
    u = jnp.tanh(emb_proj[:, 2 * H:] + r * b_u)
    h = (1.0 - z) * u                                             # [N, H]

    mean = jnp.sum(h, axis=0, keepdims=True) * inv_n              # [1, H]
    mproj = jnp.dot(mean, w2_m_ref[...],
                    preferred_element_type=jnp.float32) + b2_rzc_ref[...]         # [1, 3G]
    r2 = jax.nn.sigmoid(mproj[:, :G])
    z2 = jax.nn.sigmoid(mproj[:, G:2 * G])
    u2 = jnp.tanh(mproj[:, 2 * G:] + r2 * b2_u)
    g = (1.0 - z2) * u2                                           # [1, G]

    if layers > 1:
        mat_copy.wait()
        # 0/1 mask is exact in bf16; single resident copy, built straight from the int8 adjacency.
        g2g = (mat_vmem_ref[...].astype(jnp.int32) == 1).astype(jnp.bfloat16)     # [N, N]

        w_nei = w_nei_ref[...]
        w_g = w_g_ref[...]
        w_hu = w_hu_ref[...]
        w2_m = w2_m_ref[...]
        w2_gu = w2_gu_ref[...]
        b2_rzc = b2_rzc_ref[...]

        def layer_step(h, g):
            # ---------------- gene_gru ----------------
            # bf16 MXU inputs, f32 accumulation for the dominant N^2*H aggregation.
            neigh = jnp.dot(g2g, h.astype(jnp.bfloat16),
                            preferred_element_type=jnp.float32)                   # [N, H]
            gates = (emb_proj
                     + jnp.dot(neigh, w_nei, preferred_element_type=jnp.float32)
                     + jnp.dot(g, w_g, preferred_element_type=jnp.float32))       # [1,3H] bcast
            hproj = jnp.dot(h, w_hu, preferred_element_type=jnp.float32)          # r|z|u, one dot
            r = jax.nn.sigmoid(gates[:, :H] + hproj[:, :H])
            z = jax.nn.sigmoid(gates[:, H:2 * H] + hproj[:, H:2 * H])
            u = jnp.tanh(gates[:, 2 * H:] + r * (hproj[:, 2 * H:] + b_u))
            h_new = z * h + (1.0 - z) * u

            # ---------------- g_gru ----------------
            mean = jnp.sum(h_new, axis=0, keepdims=True) * inv_n                  # [1, H]
            mproj = jnp.dot(mean, w2_m, preferred_element_type=jnp.float32) + b2_rzc
            gproj = jnp.dot(g, w2_gu, preferred_element_type=jnp.float32)         # r|z|u, one dot
            r2 = jax.nn.sigmoid(mproj[:, :G] + gproj[:, :G])
            z2 = jax.nn.sigmoid(mproj[:, G:2 * G] + gproj[:, G:2 * G])
            u2 = jnp.tanh(mproj[:, 2 * G:] + r2 * (gproj[:, 2 * G:] + b2_u))
            g_new = z2 * g + (1.0 - z2) * u2
            return h_new, g_new

        if layers <= 4:
            for _ in range(layers - 1):          # static unroll for shallow stacks (demo: 2)
                h, g = layer_step(h, g)
        else:
            # deep stacks: keep vreg pressure / code size bounded
            h, g = jax.lax.fori_loop(0, layers - 1, lambda _, c: layer_step(*c), (h, g))

    geneh_out_ref[...] = h
    g_out_ref[...] = g


# ----------------------------------------------------------------------------- params / packing

def init_params(key, E, G):
    """Per-segment Linear params, PyTorch-equivalent shapes but stored as [in, out]."""
    H = E  # GRNGOB requires gene_emb dim == gene_hid (gene_h = zeros_like(gene_emb))
    ks = iter(jax.random.split(key, 24))

    def lin(fan_in, fan_out):
        bound = 1.0 / (fan_in ** 0.5)
        w = jax.random.uniform(next(ks), (fan_in, fan_out), jnp.float32, -bound, bound)
        b = jax.random.uniform(next(ks), (1, fan_out), jnp.float32, -bound, bound)
        return w, b

    p = {}
    # gene_gru = GRUCell(x_dim = 2E + G, h_dim = H); rz input order = [emb, neigh, g, h]
    p['wr'], p['br'] = lin(2 * E + G + H, H)
    p['wz'], p['bz'] = lin(2 * E + G + H, H)
    p['wc'], p['bc'] = lin(2 * E + G, H)
    p['wu'], p['bu'] = lin(H, H)
    # g_gru = GRUCell(x_dim = H, h_dim = G); rz input order = [mean, g]
    p['wr2'], p['br2'] = lin(H + G, G)
    p['wz2'], p['bz2'] = lin(H + G, G)
    p['wc2'], p['bc2'] = lin(H, G)
    p['wu2'], p['bu2'] = lin(G, G)
    return p


def _pack_params(p, E, G):
    """Split weights by input segment and lane-merge r|z|c (and h-path r|z|u) — no in-kernel concats."""
    H = E
    w_emb = jnp.concatenate([p['wr'][:E], p['wz'][:E], p['wc'][:E]], axis=1)            # [E, 3H]
    w_nei = jnp.concatenate([p['wr'][E:2 * E], p['wz'][E:2 * E], p['wc'][E:2 * E]], 1)  # [E, 3H]
    w_g = jnp.concatenate([p['wr'][2 * E:2 * E + G], p['wz'][2 * E:2 * E + G],
                           p['wc'][2 * E:]], axis=1)                                    # [G, 3H]
    w_hu = jnp.concatenate([p['wr'][2 * E + G:], p['wz'][2 * E + G:], p['wu']], axis=1)  # [H, 3H]
    b_rzc = jnp.concatenate([p['br'], p['bz'], p['bc']], axis=1)                        # [1, 3H]

    w2_m = jnp.concatenate([p['wr2'][:H], p['wz2'][:H], p['wc2']], axis=1)              # [H, 3G]
    w2_gu = jnp.concatenate([p['wr2'][H:], p['wz2'][H:], p['wu2']], axis=1)             # [G, 3G]
    b2_rzc = jnp.concatenate([p['br2'], p['bz2'], p['bc2']], axis=1)                    # [1, 3G]

    return (w_emb, w_nei, w_g, w_hu, b_rzc, p['bu'], w2_m, w2_gu, b2_rzc, p['bu2'])


# ----------------------------------------------------------------------------- forward wrapper

@functools.partial(jax.jit, static_argnames=('layers',))
def grngob_forward(params, gene_emb, mat, layers=2):
    n, E = gene_emb.shape
    H = E
    G = params['wu2'].shape[0]
    packed = _pack_params(params, E, G)

    # Adjacency values are small labels (0..5): pass as int8 → 1 B/elem HBM->VMEM DMA.
    mat_i8 = mat.astype(jnp.int8)

    # Explicit scoped-VMEM budget (v5e default is only 16 MiB; v7x physical VMEM is 64 MiB):
    # int8 adjacency scratch + h/gates working set + packed weights + headroom.
    weight_bytes = sum(int(w.size) * 4 for w in packed)
    est = n * n + n * (8 * H) * 4 + weight_bytes + (2 << 20)
    vmem_limit = int(min(48 * 1024 * 1024, max(8 * 1024 * 1024, est)))

    kernel = functools.partial(_grngob_kernel, layers=layers)
    gene_h, g_h = pl.pallas_call(
        kernel,
        out_shape=(jax.ShapeDtypeStruct((n, H), jnp.float32),
                   jax.ShapeDtypeStruct((1, G), jnp.float32)),
        in_specs=[VMEM_SPEC, ANY_SPEC] + [VMEM_SPEC] * len(packed),
        out_specs=(VMEM_SPEC, VMEM_SPEC),
        scratch_shapes=[pltpu.VMEM((n, n), jnp.int8),        # adjacency landing buffer
                        pltpu.SemaphoreType.DMA(())],        # its completion semaphore
        compiler_params=pltpu.CompilerParams(vmem_limit_bytes=vmem_limit),
    )(gene_emb, mat_i8, *packed)

    # TODO(synk): F.dropout(gene_h, dp, self.training) is stochastic in training mode;
    #             implemented as eval-mode identity here.
    # TODO(synk): for N >~ 2k, stream adjacency row-blocks (emit_pipeline) and add a
    #             row-block grid with dimension_semantics=('parallel',) for v7x dual-TC.
    return gene_h, g_h[0]          # g_h returned 1-D to match the PyTorch module


# ----------------------------------------------------------------------------- pure-JAX reference

def reference_forward(params, gene_emb, mat, layers=2):
    dot = functools.partial(jnp.matmul, precision=jax.lax.Precision.HIGHEST)
    n, E = gene_emb.shape
    G = params['wu2'].shape[0]
    g2g = (mat == 1).astype(jnp.float32)
    gene_h = jnp.zeros((n, E), jnp.float32)
    g_h = jnp.zeros((1, G), jnp.float32)

    def gru(x, h, wr, br, wz, bz, wc, bc, wu, bu):
        rz = jnp.concatenate([x, h], axis=-1)
        r = jax.nn.sigmoid(dot(rz, wr) + br)
        z = jax.nn.sigmoid(dot(rz, wz) + bz)
        u = jnp.tanh(dot(x, wc) + bc + r * (dot(h, wu) + bu))
        return z * h + (1.0 - z) * u

    for _ in range(layers):
        neigh = dot(g2g, gene_h)
        gene_input = jnp.concatenate([gene_emb, neigh], axis=-1)
        x = jnp.concatenate([gene_input, jnp.broadcast_to(g_h, (n, G))], axis=-1)
        gene_h = gru(x, gene_h, params['wr'], params['br'], params['wz'], params['bz'],
                     params['wc'], params['bc'], params['wu'], params['bu'])
        mean = jnp.sum(gene_h, axis=0, keepdims=True) / n
        g_h = gru(mean, g_h, params['wr2'], params['br2'], params['wz2'], params['bz2'],
                  params['wc2'], params['bc2'], params['wu2'], params['bu2'])
    return gene_h, g_h


# ----------------------------------------------------------------------------- main

if __name__ == "__main__":
    key = jax.random.PRNGKey(0)
    N, E, G = 8, 32, 16          # genes, gene_emb dim (= gene_hid), g_hid; edge_dim unused in fwd

    k_inp, k_mat, k_par = jax.random.split(key, 3)
    gene_emb = jax.random.normal(k_inp, (N, E), jnp.float32)
    mat = jax.random.bernoulli(k_mat, 0.4, (N, N)).astype(jnp.int32)
    params = init_params(k_par, E, G)

    gene_h, g_h = grngob_forward(params, gene_emb, mat)
    gene_h, g_h = jax.block_until_ready((gene_h, g_h))

    ref_h, ref_g = reference_forward(params, gene_emb, mat)

    assert gene_h.shape == (N, E) and gene_h.dtype == jnp.float32
    assert g_h.shape == (G,) and g_h.dtype == jnp.float32
    assert jnp.allclose(gene_h, ref_h, atol=5e-3, rtol=5e-3), (gene_h, ref_h)
    assert jnp.allclose(g_h, ref_g[0], atol=5e-3, rtol=5e-3), (g_h, ref_g)

    print("KERNEL_OK")
</pallas_src>

<mosaic_0001>
module attributes {stable_mosaic.version = 11 : i64} {
  func.func @_grngob_kernel(%arg0: memref<8x32xf32, #tpu.memory_space<vmem>>, %arg1: memref<8x8xi8, #tpu.memory_space<any>>, %arg2: memref<32x96xf32, #tpu.memory_space<vmem>>, %arg3: memref<32x96xf32, #tpu.memory_space<vmem>>, %arg4: memref<16x96xf32, #tpu.memory_space<vmem>>, %arg5: memref<32x96xf32, #tpu.memory_space<vmem>>, %arg6: memref<1x96xf32, #tpu.memory_space<vmem>>, %arg7: memref<1x32xf32, #tpu.memory_space<vmem>>, %arg8: memref<32x48xf32, #tpu.memory_space<vmem>>, %arg9: memref<16x48xf32, #tpu.memory_space<vmem>>, %arg10: memref<1x48xf32, #tpu.memory_space<vmem>>, %arg11: memref<1x16xf32, #tpu.memory_space<vmem>>, %arg12: memref<8x32xf32, #tpu.memory_space<vmem>>, %arg13: memref<1x16xf32, #tpu.memory_space<vmem>>, %arg14: memref<8x8xi8, #tpu.memory_space<vmem>>, %arg15: memref<!tpu.dma_semaphore, #tpu.memory_space<semaphore_mem>>) attributes {dimension_semantics = [], scalar_prefetch = 0 : i64, scratch_operands = 2 : i64, tpu.core_type = #tpu.core_type<tc>} {
    tpu.enqueue_dma source(%arg1 : memref<8x8xi8, #tpu.memory_space<any>>) target(%arg14 : memref<8x8xi8, #tpu.memory_space<vmem>>) target_semaphore(%arg15 : memref<!tpu.dma_semaphore, #tpu.memory_space<semaphore_mem>>)
    %c0 = arith.constant 0 : index
    %c0_0 = arith.constant 0 : index
    %0 = vector.load %arg0[%c0, %c0_0] : memref<8x32xf32, #tpu.memory_space<vmem>>, vector<8x32xf32>
    %c0_1 = arith.constant 0 : index
    %c0_2 = arith.constant 0 : index
    %1 = vector.load %arg7[%c0_1, %c0_2] : memref<1x32xf32, #tpu.memory_space<vmem>>, vector<1x32xf32>
    %c0_3 = arith.constant 0 : index
    %c0_4 = arith.constant 0 : index
    %2 = vector.load %arg11[%c0_3, %c0_4] : memref<1x16xf32, #tpu.memory_space<vmem>>, vector<1x16xf32>
    %c0_5 = arith.constant 0 : index
    %c0_6 = arith.constant 0 : index
    %3 = vector.load %arg2[%c0_5, %c0_6] : memref<32x96xf32, #tpu.memory_space<vmem>>, vector<32x96xf32>
    %cst = arith.constant dense<0.000000e+00> : vector<8x96xf32>
    %4 = tpu.matmul %0, %3, %cst {dimension_numbers = #tpu.dot_dimension_numbers<[1], [0], [0], [1], [0, 0, 1, 1], [], []>} : vector<8x32xf32>, vector<32x96xf32>, vector<8x96xf32> -> vector<8x96xf32>
    %c0_7 = arith.constant 0 : index
    %c0_8 = arith.constant 0 : index
    %5 = vector.load %arg6[%c0_7, %c0_8] : memref<1x96xf32, #tpu.memory_space<vmem>>, vector<1x96xf32>
    %6 = vector.broadcast %5 : vector<1x96xf32> to vector<8x96xf32>
    %7 = arith.addf %4, %6 : vector<8x96xf32>
    %8 = vector.extract_strided_slice %7 {offsets = [0, 0], sizes = [8, 32], strides = [1, 1]} : vector<8x96xf32> to vector<8x32xf32>
    %9 = arith.negf %8 : vector<8x32xf32>
    %10 = math.exp %9 : vector<8x32xf32>
    %cst_9 = arith.constant 1.000000e+00 : f32
    %11 = vector.broadcast %cst_9 : f32 to vector<8x32xf32>
    %12 = arith.addf %11, %10 : vector<8x32xf32>
    %13 = arith.divf %11, %12 : vector<8x32xf32>
    %14 = vector.extract_strided_slice %7 {offsets = [0, 32], sizes = [8, 32], strides = [1, 1]} : vector<8x96xf32> to vector<8x32xf32>
    %15 = arith.negf %14 : vector<8x32xf32>
    %16 = math.exp %15 : vector<8x32xf32>
    %cst_10 = arith.constant 1.000000e+00 : f32
    %17 = vector.broadcast %cst_10 : f32 to vector<8x32xf32>
    %18 = arith.addf %17, %16 : vector<8x32xf32>
    %19 = arith.divf %17, %18 : vector<8x32xf32>
    %20 = vector.extract_strided_slice %7 {offsets = [0, 64], sizes = [8, 32], strides = [1, 1]} : vector<8x96xf32> to vector<8x32xf32>
    %21 = vector.broadcast %1 : vector<1x32xf32> to vector<8x32xf32>
    %22 = arith.mulf %13, %21 : vector<8x32xf32>
    %23 = arith.addf %20, %22 : vector<8x32xf32>
    %24 = math.tanh %23 : vector<8x32xf32>
    %cst_11 = arith.constant 1.000000e+00 : f32
    %25 = vector.broadcast %cst_11 : f32 to vector<8x32xf32>
    %26 = arith.subf %25, %19 : vector<8x32xf32>
    %27 = arith.mulf %26, %24 : vector<8x32xf32>
    %cst_12 = arith.constant dense<0.000000e+00> : vector<32xf32>
    %28 = vector.multi_reduction <add>, %27, %cst_12 [0] : vector<8x32xf32> to vector<32xf32>
    %29 = vector.shape_cast %28 : vector<32xf32> to vector<1x32xf32>
    %cst_13 = arith.constant 1.250000e-01 : f32
    %30 = vector.broadcast %cst_13 : f32 to vector<1x32xf32>
    %31 = arith.mulf %29, %30 : vector<1x32xf32>
    %c0_14 = arith.constant 0 : index
    %c0_15 = arith.constant 0 : index
    %32 = vector.load %arg8[%c0_14, %c0_15] : memref<32x48xf32, #tpu.memory_space<vmem>>, vector<32x48xf32>
    %cst_16 = arith.constant dense<0.000000e+00> : vector<1x48xf32>
    %33 = tpu.matmul %31, %32, %cst_16 {dimension_numbers = #tpu.dot_dimension_numbers<[1], [0], [0], [1], [0, 0, 1, 1], [], []>} : vector<1x32xf32>, vector<32x48xf32>, vector<1x48xf32> -> vector<1x48xf32>
    %c0_17 = arith.constant 0 : index
    %c0_18 = arith.constant 0 : index
    %34 = vector.load %arg10[%c0_17, %c0_18] : memref<1x48xf32, #tpu.memory_space<vmem>>, vector<1x48xf32>
    %35 = arith.addf %33, %34 : vector<1x48xf32>
    %36 = vector.extract_strided_slice %35 {offsets = [0, 0], sizes = [1, 16], strides = [1, 1]} : vector<1x48xf32> to vector<1x16xf32>
    %37 = arith.negf %36 : vector<1x16xf32>
    %38 = math.exp %37 : vector<1x16xf32>
    %cst_19 = arith.constant 1.000000e+00 : f32
    %39 = vector.broadcast %cst_19 : f32 to vector<1x16xf32>
    %40 = arith.addf %39, %38 : vector<1x16xf32>
    %41 = arith.divf %39, %40 : vector<1x16xf32>
    %42 = vector.extract_strided_slice %35 {offsets = [0, 16], sizes = [1, 16], strides = [1, 1]} : vector<1x48xf32> to vector<1x16xf32>
    %43 = arith.negf %42 : vector<1x16xf32>
    %44 = math.exp %43 : vector<1x16xf32>
    %cst_20 = arith.constant 1.000000e+00 : f32
    %45 = vector.broadcast %cst_20 : f32 to vector<1x16xf32>
    %46 = arith.addf %45, %44 : vector<1x16xf32>
    %47 = arith.divf %45, %46 : vector<1x16xf32>
    %48 = vector.extract_strided_slice %35 {offsets = [0, 32], sizes = [1, 16], strides = [1, 1]} : vector<1x48xf32> to vector<1x16xf32>
    %49 = arith.mulf %41, %2 : vector<1x16xf32>
    %50 = arith.addf %48, %49 : vector<1x16xf32>
    %51 = math.tanh %50 : vector<1x16xf32>
    %cst_21 = arith.constant 1.000000e+00 : f32
    %52 = vector.broadcast %cst_21 : f32 to vector<1x16xf32>
    %53 = arith.subf %52, %47 : vector<1x16xf32>
    %54 = arith.mulf %53, %51 : vector<1x16xf32>
    tpu.wait_dma2 semaphore(%arg15 : memref<!tpu.dma_semaphore, #tpu.memory_space<semaphore_mem>>) src(%arg1 : memref<8x8xi8, #tpu.memory_space<any>>) dst(%arg14 : memref<8x8xi8, #tpu.memory_space<vmem>>)
    %c0_22 = arith.constant 0 : index
    %c0_23 = arith.constant 0 : index
    %55 = vector.load %arg14[%c0_22, %c0_23] : memref<8x8xi8, #tpu.memory_space<vmem>>, vector<8x8xi8>
    %56 = arith.extsi %55 : vector<8x8xi8> to vector<8x8xi32>
    %c1_i32 = arith.constant 1 : i32
    %57 = vector.broadcast %c1_i32 : i32 to vector<8x8xi32>
    %58 = arith.cmpi eq, %56, %57 : vector<8x8xi32>
    %59 = arith.extui %58 : vector<8x8xi1> to vector<8x8xi32>
    %60 = arith.sitofp %59 : vector<8x8xi32> to vector<8x8xf32>
    %61 = arith.truncf %60 : vector<8x8xf32> to vector<8x8xbf16>
    %c0_24 = arith.constant 0 : index
    %c0_25 = arith.constant 0 : index
    %62 = vector.load %arg3[%c0_24, %c0_25] : memref<32x96xf32, #tpu.memory_space<vmem>>, vector<32x96xf32>
    %c0_26 = arith.constant 0 : index
    %c0_27 = arith.constant 0 : index
    %63 = vector.load %arg4[%c0_26, %c0_27] : memref<16x96xf32, #tpu.memory_space<vmem>>, vector<16x96xf32>
    %c0_28 = arith.constant 0 : index
    %c0_29 = arith.constant 0 : index
    %64 = vector.load %arg5[%c0_28, %c0_29] : memref<32x96xf32, #tpu.memory_space<vmem>>, vector<32x96xf32>
    %c0_30 = arith.constant 0 : index
    %c0_31 = arith.constant 0 : index
    %65 = vector.load %arg8[%c0_30, %c0_31] : memref<32x48xf32, #tpu.memory_space<vmem>>, vector<32x48xf32>
    %c0_32 = arith.constant 0 : index
    %c0_33 = arith.constant 0 : index
    %66 = vector.load %arg9[%c0_32, %c0_33] : memref<16x48xf32, #tpu.memory_space<vmem>>, vector<16x48xf32>
    %c0_34 = arith.constant 0 : index
    %c0_35 = arith.constant 0 : index
    %67 = vector.load %arg10[%c0_34, %c0_35] : memref<1x48xf32, #tpu.memory_space<vmem>>, vector<1x48xf32>
    %68 = arith.truncf %27 : vector<8x32xf32> to vector<8x32xbf16>
    %cst_36 = arith.constant dense<0.000000e+00> : vector<8x32xf32>
    %69 = tpu.matmul %61, %68, %cst_36 {dimension_numbers = #tpu.dot_dimension_numbers<[1], [0], [0], [1], [0, 0, 1, 1], [], []>} : vector<8x8xbf16>, vector<8x32xbf16>, vector<8x32xf32> -> vector<8x32xf32>
    %cst_37 = arith.constant dense<0.000000e+00> : vector<8x96xf32>
    %70 = tpu.matmul %69, %62, %cst_37 {dimension_numbers = #tpu.dot_dimension_numbers<[1], [0], [0], [1], [0, 0, 1, 1], [], []>} : vector<8x32xf32>, vector<32x96xf32>, vector<8x96xf32> -> vector<8x96xf32>
    %71 = arith.addf %7, %70 : vector<8x96xf32>
    %cst_38 = arith.constant dense<0.000000e+00> : vector<1x96xf32>
    %72 = tpu.matmul %54, %63, %cst_38 {dimension_numbers = #tpu.dot_dimension_numbers<[1], [0], [0], [1], [0, 0, 1, 1], [], []>} : vector<1x16xf32>, vector<16x96xf32>, vector<1x96xf32> -> vector<1x96xf32>
    %73 = vector.broadcast %72 : vector<1x96xf32> to vector<8x96xf32>
    %74 = arith.addf %71, %73 : vector<8x96xf32>
    %cst_39 = arith.constant dense<0.000000e+00> : vector<8x96xf32>
    %75 = tpu.matmul %27, %64, %cst_39 {dimension_numbers = #tpu.dot_dimension_numbers<[1], [0], [0], [1], [0, 0, 1, 1], [], []>} : vector<8x32xf32>, vector<32x96xf32>, vector<8x96xf32> -> vector<8x96xf32>
    %76 = vector.extract_strided_slice %74 {offsets = [0, 0], sizes = [8, 32], strides = [1, 1]} : vector<8x96xf32> to vector<8x32xf32>
    %77 = vector.extract_strided_slice %75 {offsets = [0, 0], sizes = [8, 32], strides = [1, 1]} : vector<8x96xf32> to vector<8x32xf32>
    %78 = arith.addf %76, %77 : vector<8x32xf32>
    %79 = arith.negf %78 : vector<8x32xf32>
    %80 = math.exp %79 : vector<8x32xf32>
    %cst_40 = arith.constant 1.000000e+00 : f32
    %81 = vector.broadcast %cst_40 : f32 to vector<8x32xf32>
    %82 = arith.addf %81, %80 : vector<8x32xf32>
    %83 = arith.divf %81, %82 : vector<8x32xf32>
    %84 = vector.extract_strided_slice %74 {offsets = [0, 32], sizes = [8, 32], strides = [1, 1]} : vector<8x96xf32> to vector<8x32xf32>
    %85 = vector.extract_strided_slice %75 {offsets = [0, 32], sizes = [8, 32], strides = [1, 1]} : vector<8x96xf32> to vector<8x32xf32>
    %86 = arith.addf %84, %85 : vector<8x32xf32>
    %87 = arith.negf %86 : vector<8x32xf32>
    %88 = math.exp %87 : vector<8x32xf32>
    %cst_41 = arith.constant 1.000000e+00 : f32
    %89 = vector.broadcast %cst_41 : f32 to vector<8x32xf32>
    %90 = arith.addf %89, %88 : vector<8x32xf32>
    %91 = arith.divf %89, %90 : vector<8x32xf32>
    %92 = vector.extract_strided_slice %74 {offsets = [0, 64], sizes = [8, 32], strides = [1, 1]} : vector<8x96xf32> to vector<8x32xf32>
    %93 = vector.extract_strided_slice %75 {offsets = [0, 64], sizes = [8, 32], strides = [1, 1]} : vector<8x96xf32> to vector<8x32xf32>
    %94 = vector.broadcast %1 : vector<1x32xf32> to vector<8x32xf32>
    %95 = arith.addf %93, %94 : vector<8x32xf32>
    %96 = arith.mulf %83, %95 : vector<8x32xf32>
    %97 = arith.addf %92, %96 : vector<8x32xf32>
    %98 = math.tanh %97 : vector<8x32xf32>
    %99 = arith.mulf %91, %27 : vector<8x32xf32>
    %cst_42 = arith.constant 1.000000e+00 : f32
    %100 = vector.broadcast %cst_42 : f32 to vector<8x32xf32>
    %101 = arith.subf %100, %91 : vector<8x32xf32>
    %102 = arith.mulf %101, %98 : vector<8x32xf32>
    %103 = arith.addf %99, %102 : vector<8x32xf32>
    %cst_43 = arith.constant dense<0.000000e+00> : vector<32xf32>
    %104 = vector.multi_reduction <add>, %103, %cst_43 [0] : vector<8x32xf32> to vector<32xf32>
    %105 = vector.shape_cast %104 : vector<32xf32> to vector<1x32xf32>
    %cst_44 = arith.constant 1.250000e-01 : f32
    %106 = vector.broadcast %cst_44 : f32 to vector<1x32xf32>
    %107 = arith.mulf %105, %106 : vector<1x32xf32>
    %cst_45 = arith.constant dense<0.000000e+00> : vector<1x48xf32>
    %108 = tpu.matmul %107, %65, %cst_45 {dimension_numbers = #tpu.dot_dimension_numbers<[1], [0], [0], [1], [0, 0, 1, 1], [], []>} : vector<1x32xf32>, vector<32x48xf32>, vector<1x48xf32> -> vector<1x48xf32>
    %109 = arith.addf %108, %67 : vector<1x48xf32>
    %cst_46 = arith.constant dense<0.000000e+00> : vector<1x48xf32>
    %110 = tpu.matmul %54, %66, %cst_46 {dimension_numbers = #tpu.dot_dimension_numbers<[1], [0], [0], [1], [0, 0, 1, 1], [], []>} : vector<1x16xf32>, vector<16x48xf32>, vector<1x48xf32> -> vector<1x48xf32>
    %111 = vector.extract_strided_slice %109 {offsets = [0, 0], sizes = [1, 16], strides = [1, 1]} : vector<1x48xf32> to vector<1x16xf32>
    %112 = vector.extract_strided_slice %110 {offsets = [0, 0], sizes = [1, 16], strides = [1, 1]} : vector<1x48xf32> to vector<1x16xf32>
    %113 = arith.addf %111, %112 : vector<1x16xf32>
    %114 = arith.negf %113 : vector<1x16xf32>
    %115 = math.exp %114 : vector<1x16xf32>
    %cst_47 = arith.constant 1.000000e+00 : f32
    %116 = vector.broadcast %cst_47 : f32 to vector<1x16xf32>
    %117 = arith.addf %116, %115 : vector<1x16xf32>
    %118 = arith.divf %116, %117 : vector<1x16xf32>
    %119 = vector.extract_strided_slice %109 {offsets = [0, 16], sizes = [1, 16], strides = [1, 1]} : vector<1x48xf32> to vector<1x16xf32>
    %120 = vector.extract_strided_slice %110 {offsets = [0, 16], sizes = [1, 16], strides = [1, 1]} : vector<1x48xf32> to vector<1x16xf32>
    %121 = arith.addf %119, %120 : vector<1x16xf32>
    %122 = arith.negf %121 : vector<1x16xf32>
    %123 = math.exp %122 : vector<1x16xf32>
    %cst_48 = arith.constant 1.000000e+00 : f32
    %124 = vector.broadcast %cst_48 : f32 to vector<1x16xf32>
    %125 = arith.addf %124, %123 : vector<1x16xf32>
    %126 = arith.divf %124, %125 : vector<1x16xf32>
    %127 = vector.extract_strided_slice %109 {offsets = [0, 32], sizes = [1, 16], strides = [1, 1]} : vector<1x48xf32> to vector<1x16xf32>
    %128 = vector.extract_strided_slice %110 {offsets = [0, 32], sizes = [1, 16], strides = [1, 1]} : vector<1x48xf32> to vector<1x16xf32>
    %129 = arith.addf %128, %2 : vector<1x16xf32>
    %130 = arith.mulf %118, %129 : vector<1x16xf32>
    %131 = arith.addf %127, %130 : vector<1x16xf32>
    %132 = math.tanh %131 : vector<1x16xf32>
    %133 = arith.mulf %126, %54 : vector<1x16xf32>
    %cst_49 = arith.constant 1.000000e+00 : f32
    %134 = vector.broadcast %cst_49 : f32 to vector<1x16xf32>
    %135 = arith.subf %134, %126 : vector<1x16xf32>
    %136 = arith.mulf %135, %132 : vector<1x16xf32>
    %137 = arith.addf %133, %136 : vector<1x16xf32>
    %c0_50 = arith.constant 0 : index
    %c0_51 = arith.constant 0 : index
    %138 = vector.load %arg12[%c0_50, %c0_51] : memref<8x32xf32, #tpu.memory_space<vmem>>, vector<8x32xf32>
    tpu.vector_store %arg12[%c0_50, %c0_51], %103 {strides = array<i32>} : memref<8x32xf32, #tpu.memory_space<vmem>>, vector<8x32xf32>,
    %c0_52 = arith.constant 0 : index
    %c0_53 = arith.constant 0 : index
    %139 = vector.load %arg13[%c0_52, %c0_53] : memref<1x16xf32, #tpu.memory_space<vmem>>, vector<1x16xf32>
    tpu.vector_store %arg13[%c0_52, %c0_53], %137 {strides = array<i32>} : memref<1x16xf32, #tpu.memory_space<vmem>>, vector<1x16xf32>,
    return
  }
}

</mosaic_0001>

<bundles_post_ra>
// kernel: grngob_forward.1
= control target key start
LH: loop header
LB: loop body
LE: loop exit
PB: predicated region body
PF: predicated region fallthrough
CT: control target
= control target key end

     0   :  { %19 = vsyncpa [#allocation5], 0  ;;  %s1413_s0 = inlined_call_operand.vmem [shape: f32[8,32], index: 0, kind: input, shape index: {}]   ;;  %s1414_s1 = inlined_call_operand.vmem [shape: s8[8,8], index: 1, kind: input, shape index: {}]   ;;  %s1415_s2 = inlined_call_operand.vmem [shape: f32[32,96], index: 2, kind: input, shape index: {}]   ;;  %s1416_s3 = inlined_call_operand.vmem [shape: f32[32,96], index: 3, kind: input, shape index: {}]   ;;  %s1417_s4 = inlined_call_operand.vmem [shape: f32[16,96], index: 4, kind: input, shape index: {}]   ;;  %s1418_s5 = inlined_call_operand.vmem [shape: f32[32,96], index: 5, kind: input, shape index: {}]   ;;  %s1419_s6 = inlined_call_operand.vmem [shape: f32[1,96], index: 6, kind: input, shape index: {}]   ;;  %s1420_s7 = inlined_call_operand.vmem [shape: f32[1,32], index: 7, kind: input, shape index: {}]   ;;  %s1421_s8 = inlined_call_operand.vmem [shape: f32[32,48], index: 8, kind: input, shape index: {}]   ;;  %s1422_s9 = inlined_call_operand.vmem [shape: f32[16,48], index: 9, kind: input, shape index: {}]   ;;  %s1423_s10 = inlined_call_operand.vmem [shape: f32[1,48], index: 10, kind: input, shape index: {}]   ;;  %s1424_s11 = inlined_call_operand.vmem [shape: f32[1,16], index: 11, kind: input, shape index: {}]   ;;  %s1425_s12 = inlined_call_operand.hbm [shape: f32[8,32], index: 12, kind: output, shape index: {0}]   ;;  %s1426_s13 = inlined_call_operand.hbm [shape: f32[1,16], index: 13, kind: output, shape index: {1}]  }
   0x1   :  { %20 = vsyncpa [#allocation7], 0  ;;  %v61_v0 = vld [vmem:[%s1414_s1] sm:$0x3] }
   0x2   :  { %62 = vst [vmem:[#allocation2] sm:$0x3] %v61_v0 }
   0x3   :  { %87 = vsyncadd [#allocation3], 32  ;;  %v91_v1 = vld [vmem:[%s1415_s2] sm:$0xff]  ;;  %v92_v2 = vld [vmem:[%s1415_s2 + $0x8] sm:$0xff]  ;;  %v1134_v3 = vmov 0.0|0.0   ;;  %vm1135_vm0 = vmmov 0  }
   0x4   :  { %1015 = vmatprep.subr.bf16.mxu0 %v1134_v3  ;;  %v1016_v4 = vpack.c.bf16 %v92_v2, %v91_v1  ;;  %v93_v5 = vld [vmem:[%s1415_s2 + $0x10] sm:$0xff]  ;;  %v94_v6 = vld [vmem:[%s1415_s2 + $0x18] sm:$0xff]  ;;  %1021 = vmatprep.subr.bf16.mxu1 %v1134_v3  ;;  %v1136_v7 = vmov 0.0   ;;  %v88_v9 = vld [vmem:[%s1413_s0] sm:$0xff]  ;;  %vm102_vm1 = vcmask 261120   ;;  %s1137_s0 = smov 64  }
   0x5   :  { %948 = vmatprep.mubr.msk.f32.mxu0 %vm1135_vm0, %v1136_v7  ;;  %959 = vmatprep.mubr.msk.f32.mxu1 %vm1135_vm0, %v1136_v7  ;;  %v1019_v8 = vpack.c.bf16 %v94_v6, %v93_v5  ;;  %v891_v10 = vld [vmem:[%s1419_s6] ss:$0 sm:$0xff]  ;;  %s1138_s6 = smov 96   ;;  %v211_v24 = vld [vmem:[%s1421_s8 + $0x8] sm:$0xff]  ;;  %v212_v25 = vld [vmem:[%s1421_s8 + $0x10] sm:$0xff]  ;;  %vm201_vm2 = vcmask 523520  }
   0x6   :  { %1017 = vmatpush3.bf16.msra.mxu0 %v1016_v4  ;;  %v1248_v17 = vld [vmem:[%s1420_s7] ss:$0 sm:$0xff]  ;;  %v213_v27 = vld [vmem:[%s1421_s8 + $0x18] sm:$0xff]  ;;  %s1139_s16 = smov 32   ;;  %s1140_s1 = smov 112  }
   0x7   :  { %1018 = vmatprep.subr.bf16.mxu0 %v1134_v3  ;;  %v210_v23 = vld [vmem:[%s1421_s8] sm:$0xff]  ;;  %v1025_v28 = vpack.c.bf16 %v213_v27, %v212_v25 }
   0x8   :  { %v1022_v26 = vpack.c.bf16 %v211_v24, %v210_v23  ;;  %v214_v41 = vld [vmem:[%s1423_s10] sm:$0x1] }
   0x9   :  { %v1279_v48 = vld [vmem:[%s1424_s11] sm:$0x1] }
   0xa   :  { %1020 = vmatpush3.bf16.msra.mxu0 %v1019_v8  ;;  %1023 = vmatpush3.bf16.msra.mxu1 %v1022_v26 }
   0xb   :  { %1024 = vmatprep.subr.bf16.mxu1 %v1134_v3 }
   0xd   :  { %949 = vmatmul.mubr.msk.f32.vlgmr.msra.gmra.mrb[0].mxu0 %vm102_vm1, %v88_v9 }
   0xe   :  { %1026 = vmatpush3.bf16.msra.mxu1 %v1025_v28 }
  0xe0   :  { %v172_v11 = vpop.f32.mrb[0].mxu0 }
  0xe1   :  { %v1242_v12 = vadd.f32 %v891_v10, %v172_v11  ;;  %v950_v13 = vpop.f32.mrb[1].mxu0 }
  0xe3   :  { %v893_v14 = vmul.f32 -1.442695, %v1242_v12 }
  0xe5   :  { %1060 = vpow2.f32 %v893_v14 }
  0xef   :  { %v1061_v15 = vpop.eup %1060 }
  0xf0   :  { %v179_v16 = vadd.f32 1.0, %v1061_v15 }
  0xf2   :  { %1062 = vrcp.f32 %v179_v16 }
  0xfc   :  { %v1063_v18 = vpop.eup %1062 }
  0xfd   :  { %v188_v19 = vmul.f32 %v1063_v18, %v1248_v17  ;;  %v195_v29 = vsub.f32 1.0, %v1063_v18 }
  0xff   :  { %190 = vrot.lane.b32.xlu0 %v188_v19, %s1137_s0 }
 0x171   :  { %v191_v20 = vpop.permute.xlu0 %190 }
 0x172   :  { %v193_v21 = vadd.f32 %v191_v20, %v1242_v12 }
 0x174   :  { %1064 = vtanh.f32 %v193_v21 }
 0x17e   :  { %v1065_v22 = vpop.eup %1064 }
 0x17f   :  { %197 = vrot.lane.b32.xlu0 %v1065_v22, %s1138_s6 }
 0x1f1   :  { %v198_v30 = vpop.permute.xlu0 %197 }
 0x1f2   :  { %v1267_v31 = vmul.f32 %v198_v30, %v195_v29 }
 0x1f4   :  { %v202_v32 = vsel %vm201_vm2, %v1267_v31, 0.0  ;;  %v336_v57 = vpack.c.bf16 %v1267_v31, %v1267_v31 }
 0x1f5   :  { %v203_v33 = vrot.slane %v202_v32, 4 }
 0x1f7   :  { %v204_v34 = vadd.f32 %v203_v33, %v202_v32 }
 0x1f9   :  { %v205_v35 = vrot.slane %v204_v34, 2 }
 0x1fb   :  { %v206_v36 = vadd.f32 %v205_v35, %v204_v34 }
 0x1fd   :  { %v207_v37 = vrot.slane %v206_v36, 1 }
 0x1ff   :  { %v208_v38 = vadd.f32 %v207_v37, %v206_v36 }
 0x201   :  { %v209_v39 = vmul.f32 0.125, %v208_v38 }
 0x203   :  { %216 = vrot.lane.b32.xlu1 %v209_v39, %s1138_s6 }
 0x275   :  { %v217_v40 = vpop.permute.xlu1 %216 }
 0x276   :  { %960 = vmatmul.mubr.msk.f32.vlgmr.msra.gmra.mrb[0].mxu1 %vm102_vm1, %v217_v40 }
 0x349   :  { %v286_v42 = vpop.f32.mrb[0].mxu1 }
 0x34a   :  { %v287_v43 = vadd.f32 %v286_v42, %v214_v41  ;;  %v961_v44 = vpop.f32.mrb[1].mxu1 }
 0x34c   :  { %v896_v45 = vmul.f32 -1.442695, %v287_v43 }
 0x34e   :  { %1066 = vpow2.f32 %v896_v45 }
 0x358   :  { %v1067_v46 = vpop.eup %1066 }
 0x359   :  { %v293_v47 = vadd.f32 1.0, %v1067_v46 }
 0x35b   :  { %1068 = vrcp.f32 %v293_v47 }
 0x365   :  { %v1069_v49 = vpop.eup %1068 }
 0x366   :  { %v296_v50 = vmul.f32 %v1069_v49, %v1279_v48  ;;  %v303_v54 = vsub.f32 1.0, %v1069_v49 }
 0x368   :  { %298 = vrot.lane.b32.xlu1 %v296_v50, %s1139_s16 }
 0x3da   :  { %v299_v51 = vpop.permute.xlu1 %298 }
 0x3db   :  { %v301_v52 = vadd.f32 %v299_v51, %v287_v43 }
 0x3dd   :  { %1070 = vtanh.f32 %v301_v52 }
 0x3e7   :  { %v1071_v53 = vpop.eup %1070 }
 0x3e8   :  { %305 = vrot.lane.b32.xlu0 %v1071_v53, %s1140_s1 }
 0x45a   :  { %v306_v55 = vpop.permute.xlu0 %305 }
 0x45b   :  { %v1284_v56 = vmul.f32 %v306_v55, %v303_v54 }
 0x45c   :  { %1128 = dma.done.wait [#allocation3], 32 }
 0x45d   :  { %1129 = vsyncadd [#allocation3], 4294967264  ;;  %962 = vmatprep.subr.bf16.mxu0 %v1136_v7  ;;  %964 = vmatprep.mubr.msk.bf16.mxu0 %vm1135_vm0, %v1136_v7  ;;  %v319_v58 = vld [vmem:[%s1416_s3] sm:$0xff]  ;;  %v320_v59 = vld [vmem:[%s1416_s3 + $0x8] sm:$0xff]  ;;  %vm344_vm4 = vcmask 1043456   ;;  %vm340_vm5 = vcmask 64512   ;;  %v538_v29 = vlaneseq }
 0x45e   :  { %463 = vrot.lane.b32.xlu1 %v1284_v56, %s1140_s1  ;;  %1027 = vmatprep.subr.bf16.mxu1 %v1134_v3  ;;  %v1028_v60 = vpack.c.bf16 %v320_v59, %v319_v58  ;;  %v321_v61 = vld [vmem:[%s1416_s3 + $0x10] sm:$0xff]  ;;  %v322_v62 = vld [vmem:[%s1416_s3 + $0x18] sm:$0xff]  ;;  %v313_v0 = vld [vmem:[#allocation2] sm:$0x3]  ;;  %vm465_vm6 = vcmask 130048  }
 0x45f   :  { %338 = vrot.lane.b32.xlu0 %v336_v57, %s1138_s6  ;;  %976 = vmatprep.mubr.msk.f32.mxu1 %vm1135_vm0, %v1136_v7  ;;  %v1031_v63 = vpack.c.bf16 %v322_v62, %v321_v61  ;;  %v314_v1 = vunpack.c.0.s8 %v313_v0  ;;  %v323_v4 = vld [vmem:[%s1417_s4] sm:$0xff]  ;;  %v324_v5 = vld [vmem:[%s1417_s4 + $0x8] sm:$0xff]  ;;  %v327_v16 = vld [vmem:[%s1418_s5 + $0x10] sm:$0xff]  ;;  %v539_v30 = vshrl.u32 %v538_v29, 7 }
 0x460   :  { %1029 = vmatpush3.bf16.msra.mxu1 %v1028_v60  ;;  %v1034_v10 = vpack.c.bf16 %v324_v5, %v323_v4  ;;  %v325_v13 = vld [vmem:[%s1418_s5] sm:$0xff]  ;;  %v326_v14 = vld [vmem:[%s1418_s5 + $0x8] sm:$0xff]  ;;  %v331_v57 = vld [vmem:[%s1421_s8 + $0x10] sm:$0xff] }
 0x461   :  { %1030 = vmatprep.subr.bf16.mxu1 %v1134_v3  ;;  %vm315_vm3 = vcmp.eq.s32.totalorder %v314_v1, 1  ;;  %v1037_v15 = vpack.c.bf16 %v326_v14, %v325_v13  ;;  %v333_v23 = vld [vmem:[%s1422_s9] sm:$0xff]  ;;  %v334_v24 = vld [vmem:[%s1422_s9 + $0x8] sm:$0xff]  ;;  %v540_v32 = vsub.s32 0, %v539_v30  ;;  %v332_v59 = vld [vmem:[%s1421_s8 + $0x18] sm:$0xff] }
 0x462   :  { %625 = vrot.lane.b32.xlu1 %v1248_v17, %s1137_s0  ;;  %v897_v2 = vsel %vm315_vm3, 1.0, %v1136_v7  ;;  %v328_v17 = vld [vmem:[%s1418_s5 + $0x18] sm:$0xff]  ;;  %v1049_v26 = vpack.c.bf16 %v334_v24, %v333_v23  ;;  %v329_v54 = vld [vmem:[%s1421_s8] sm:$0xff]  ;;  %v330_v55 = vld [vmem:[%s1421_s8 + $0x8] sm:$0xff] }
 0x463   :  { %544 = vrot.lane.b32.xlu0 %v1267_v31, %s1138_s6  ;;  %v318_v9 = vpack.c.bf16 %v897_v2, %v897_v2  ;;  %v1040_v21 = vpack.c.bf16 %v328_v17, %v327_v16  ;;  %v812_v53 = vrot.slane %v1279_v48, %v540_v32  ;;  %v1043_v58 = vpack.c.bf16 %v330_v55, %v329_v54 }
 0x464   :  { %1032 = vmatpush3.bf16.msra.mxu1 %v1031_v63  ;;  %v1046_v48 = vpack.c.bf16 %v332_v59, %v331_v57 }
 0x465   :  { %1036 = vmatprep.subr.bf16.mxu1 %v1134_v3 }
 0x4d0   :  { %v464_v11 = vpop.permute.xlu1 %463 }
 0x4d1   :  { %v339_v6 = vpop.permute.xlu0 %338 }
 0x4d2   :  { %v346_v8 = vsel %vm344_vm4, %v339_v6, 0 }
 0x4d3   :  { %963 = vmatpush3.bf16.msra.mxu0 %v346_v8 }
 0x4d4   :  { %1033 = vmatprep.subr.bf16.mxu0 %v1134_v3  ;;  %v626_v38 = vpop.permute.xlu1 %625 }
 0x4d5   :  { %v545_v25 = vpop.permute.xlu0 %544 }
 0x4d6   :  { %965 = vmatmul.mubr.msk.bf16.vlgmr.msra.gmra.mrb[4].mxu0 %vm340_vm5, %v318_v9 }
 0x4d7   :  { %1035 = vmatpush3.bf16.msra.mxu0 %v1034_v10  ;;  %983 = vmatprep.mubr.msk.f32.mxu0 %vm1135_vm0, %v1136_v7 }
 0x4d8   :  { %1042 = vmatprep.subr.bf16.mxu0 %v1134_v3 }
 0x4de   :  { %984 = vmatmul.mubr.msk.f32.vlgmr.msra.gmra.mrb[2].mxu0 %vm465_vm6, %v464_v11 }
 0x4df   :  { %1005 = vmatprep.mubr.msk.f32.mxu0 %vm1135_vm0, %v1136_v7  ;;  %1044 = vmatpush3.bf16.msra.mxu0 %v1043_v58 }
 0x4e0   :  { %1045 = vmatprep.subr.bf16.mxu0 %v1134_v3 }
 0x4e3   :  { %1047 = vmatpush3.bf16.msra.mxu0 %v1046_v48 }
 0x5a9   :  { %v382_v18 = vpop.f32.mrb[4].mxu0 }
 0x5aa   :  { %v966_v19 = vpop.f32.mrb[5].mxu0  ;;  %977 = vmatmul.mubr.msk.f32.vlgmr.msra.gmra.mrb[2].mxu1 %vm102_vm1, %v382_v18 }
 0x5ab   :  { %1038 = vmatpush3.bf16.msra.mxu1 %v1037_v15  ;;  %v385_v20 = vpop.f32.mrb[6].mxu0  ;;  %994 = vmatprep.mubr.msk.f32.mxu1 %vm1135_vm0, %v1136_v7 }
 0x5ac   :  { %v967_v22 = vpop.f32.mrb[7].mxu0  ;;  %1039 = vmatprep.subr.bf16.mxu1 %v1134_v3 }
 0x5af   :  { %1041 = vmatpush3.bf16.msra.mxu1 %v1040_v21 }
 0x5b0   :  { %1048 = vmatprep.subr.bf16.mxu1 %v1134_v3 }
 0x5b1   :  { %v534_v27 = vpop.f32.mrb[2].mxu0 }
 0x5b2   :  { %995 = vmatmul.mubr.msk.f32.vlgmr.msra.gmra.mrb[4].mxu1 %vm102_vm1, %v545_v25  ;;  %v985_v28 = vpop.f32.mrb[3].mxu0  ;;  %v541_v33 = vrot.slane %v534_v27, %v540_v32 }
 0x5b3   :  { %1050 = vmatpush3.bf16.msra.mxu1 %v1049_v26  ;;  %1012 = vmatprep.mubr.msk.f32.mxu1 %vm1135_vm0, %v1136_v7 }
 0x5b6   :  { %1013 = vmatmul.mubr.msk.f32.vlgmr.msra.gmra.mrb[6].mxu1 %vm465_vm6, %v464_v11 }
 0x67d   :  { %v457_v34 = vpop.f32.mrb[2].mxu1 }
 0x67e   :  { %v461_v35 = vadd.f32 %v457_v34, %v1242_v12  ;;  %v978_v36 = vpop.f32.mrb[3].mxu1 }
 0x680   :  { %v542_v37 = vadd.f32 %v541_v33, %v461_v35 }
 0x685   :  { %v614_v39 = vpop.f32.mrb[4].mxu1 }
 0x686   :  { %v996_v40 = vpop.f32.mrb[5].mxu1  ;;  %v628_v41 = vadd.f32 %v626_v38, %v614_v39  ;;  %v618_v43 = vadd.f32 %v614_v39, %v542_v37 }
 0x688   :  { %630 = vrot.lane.b32.xlu0 %v628_v41, %s1137_s0  ;;  %v902_v44 = vmul.f32 -1.442695, %v618_v43 }
 0x689   :  { %v797_v7 = vpop.f32.mrb[6].mxu1 }
 0x68a   :  { %v1014_v42 = vpop.f32.mrb[7].mxu1  ;;  %1072 = vpow2.f32 %v902_v44 }
 0x694   :  { %v1073_v45 = vpop.eup %1072 }
 0x695   :  { %v622_v46 = vadd.f32 1.0, %v1073_v45 }
 0x697   :  { %1074 = vrcp.f32 %v622_v46 }
 0x6a1   :  { %v1075_v47 = vpop.eup %1074 }
 0x6a2   :  { %v641_v60 = vsub.f32 1.0, %v1075_v47  ;;  %v640_v62 = vmul.f32 %v1075_v47, %v1267_v31  ;;  %v335_v31 = vld [vmem:[%s1423_s10] sm:$0x1]  ;;  %s1141_s10 = smov [#allocation4]  }
 0x6a3   :  { %s853_s7 = sshll.u32 %s1141_s10, 4  ;;  %s854_s7 = int_to_ptr.vmem [resolvable:$true] %s853_s7 }
 0x6a4   :  { %s1084_s24 = scalar_lea.vmem %s854_s7, 128  ;;  %p1089_p1 = scmp.lt.s32.totalorder %s854_s7, %s854_s7 }
 0x6a5   :  { %p1085_p0 = scmp.ne.s32.totalorder %s854_s7, %s1084_s24  ;;  %p1090_p2 = scmp.lt.s32.totalorder %s1084_s24, %s1084_s24 }
 0x6a7   :  { %p1091_p3 = por %p1090_p2, %p1089_p1 }
 0x6a9   :  { %p1092_p4 = pnand %p1091_p3, %p1085_p0 }
 0x6fa   :  { %v631_v49 = vpop.permute.xlu0 %630 }
 0x6fb   :  { %v633_v50 = vmul.f32 %v1075_v47, %v631_v49 }
 0x6fd   :  { %635 = vrot.lane.b32.xlu1 %v633_v50, %s1137_s0 }
 0x76f   :  { %v636_v12 = vpop.permute.xlu1 %635 }
 0x770   :  { %v638_v51 = vadd.f32 %v636_v12, %v542_v37 }
 0x772   :  { %1076 = vtanh.f32 %v638_v51 }
 0x77c   :  { %v1077_v52 = vpop.eup %1076 }
 0x77d   :  { %643 = vrot.lane.b32.xlu0 %v1077_v52, %s1138_s6 }
 0x781   :  { %813 = vrot.lane.b32.xlu0 %v812_v53, %s1139_s16 }
 0x7ef   :  { %v644_v61 = vpop.permute.xlu0 %643 }
 0x7f0   :  { %v646_v63 = vmul.f32 %v644_v61, %v641_v60 }
 0x7f2   :  { %v647_v0 = vadd.f32 %v646_v63, %v640_v62 }
 0x7f3   :  { %v814_v11 = vpop.permute.xlu0 %813 }
 0x7f4   :  { %v648_v1 = vsel %vm201_vm2, %v647_v0, 0.0  ;;  %v816_v3 = vadd.f32 %v814_v11, %v797_v7 }
 0x7f5   :  { %v649_v2 = vrot.slane %v648_v1, 4 }
 0x7f7   :  { %v650_v4 = vadd.f32 %v649_v2, %v648_v1 }
 0x7f9   :  { %v651_v5 = vrot.slane %v650_v4, 2 }
 0x7fb   :  { %v652_v6 = vadd.f32 %v651_v5, %v650_v4 }
 0x7fd   :  { %v653_v8 = vrot.slane %v652_v6, 1 }
 0x7ff   :  { %v654_v9 = vadd.f32 %v653_v8, %v652_v6 }
 0x801   :  { %v655_v10 = vmul.f32 0.125, %v654_v9 }
 0x803   :  { %657 = vrot.lane.b32.xlu1 %v655_v10, %s1138_s6 }
 0x807   :  { %818 = vrot.lane.b32.xlu1 %v816_v3, %s1138_s6 }
 0x875   :  { %v658_v13 = vpop.permute.xlu1 %657 }
 0x876   :  { %1006 = vmatmul.mubr.msk.f32.vlgmr.msra.gmra.mrb[8].mxu0 %vm102_vm1, %v658_v13 }
 0x879   :  { %v819_v22 = vpop.permute.xlu1 %818 }
 0x949   :  { %v727_v14 = vpop.f32.mrb[8].mxu0 }
 0x94a   :  { %v728_v15 = vadd.f32 %v727_v14, %v335_v31  ;;  %v1007_v16 = vpop.f32.mrb[9].mxu0 }
 0x94c   :  { %v801_v17 = vadd.f32 %v797_v7, %v728_v15 }
 0x94e   :  { %v905_v18 = vmul.f32 -1.442695, %v801_v17 }
 0x950   :  { %1078 = vpow2.f32 %v905_v18 }
 0x95a   :  { %v1079_v19 = vpop.eup %1078 }
 0x95b   :  { %v805_v20 = vadd.f32 1.0, %v1079_v19 }
 0x95d   :  { %1080 = vrcp.f32 %v805_v20 }
 0x967   :  { %v1081_v21 = vpop.eup %1080 }
 0x968   :  { %v821_v23 = vmul.f32 %v1081_v21, %v819_v22 }
 0x96a   :  { %823 = vrot.lane.b32.xlu0 %v821_v23, %s1139_s16 }
 0x96e   :  { %837 = vrot.lane.b32.xlu0 %v647_v0, %s1138_s6 }
 0x9dc   :  { %v824_v24 = vpop.permute.xlu0 %823 }
 0x9dd   :  { %v826_v25 = vadd.f32 %v824_v24, %v728_v15 }
 0x9df   :  { %1082 = vtanh.f32 %v826_v25 }
 0x9e0   :  { %v838_v26 = vpop.permute.xlu0 %837 }
 0x9e1   :  { %840 = vst.msk [vmem:[#allocation4] sm:$0xff] %vm102_vm1, %v838_v26 }
 0x9e9   :  { %v1083_v27 = vpop.eup %1082 }
 0x9ea   :  { %831 = vrot.lane.b32.xlu1 %v1083_v27, %s1140_s1 }
 0x9eb   :  { %1095 = shalt.err (!%p1092_p4)
}
 0x9ec   :  { %s1096_s25 = scalar_lea.hbm %s1425_s12, 128 }
 0x9ed   :  { %p1097_p5 = scmp.ne.s32.totalorder %s1425_s12, %s1096_s25  ;;  %p1100_p6 = scmp.lt.u32.totalorder %s1096_s25, %s1425_s12 }
 0x9ef   :  { %p1102_p7 = pnand %p1100_p6, %p1097_p5 }
 0x9f1   :  { %1105 = shalt.err (!%p1102_p7)
}
 0x9f2   :  { %856 = dma.vmem_to_hbm [thread:$0]  %s854_s7, 128, %s1425_s12, [#allocation5]   ;;  %v829_v28 = vsub.f32 1.0, %v1081_v21  ;;  %v828_v32 = vmul.f32 %v1081_v21, %v1284_v56  ;;  %vm845_vm7 = vcmask 122880  }
 0x9f3   :  { %s1142_s30 = smov [#allocation6]  }
 0x9f4   :  { %s863_s14 = sshll.u32 %s1142_s30, 4  ;;  %s864_s14 = int_to_ptr.vmem [resolvable:$true] %s863_s14 }
 0x9f5   :  { %s1106_s15 = scalar_lea.vmem %s864_s14, 16  ;;  %s1110_s11 = scalar_lea.vmem %s864_s14, 32 }
 0x9f6   :  { %p1107_p8 = scmp.ne.s32.totalorder %s864_s14, %s1106_s15  ;;  %p1111_p9 = scmp.lt.s32.totalorder %s864_s14, %s864_s14 }
 0x9f7   :  { %p1112_p10 = scmp.lt.s32.totalorder %s1110_s11, %s1106_s15 }
 0x9f9   :  { %p1113_p11 = por %p1112_p10, %p1111_p9 }
 0x9fb   :  { %p1114_p12 = pnand %p1113_p11, %p1107_p8 }
 0xa5c   :  { %v832_v29 = vpop.permute.xlu1 %831 }
 0xa5d   :  { %v834_v30 = vmul.f32 %v832_v29, %v829_v28 }
 0xa5f   :  { %v835_v33 = vadd.f32 %v834_v30, %v828_v32 }
 0xa61   :  { %842 = vrot.lane.b32.xlu1 %v835_v33, %s1140_s1 }
 0xad3   :  { %v843_v34 = vpop.permute.xlu1 %842 }
 0xad4   :  { %846 = vst.msk [vmem:[#allocation6] sm:$0x1] %vm845_vm7, %v843_v34 }
 0xad5   :  { %1117 = shalt.err (!%p1114_p12)
}
 0xad6   :  { %s1118_s18 = scalar_lea.hbm %s1426_s13, 16 }
 0xad7   :  { %p1119_p13 = scmp.ne.s32.totalorder %s1426_s13, %s1118_s18  ;;  %p1122_p0 = scmp.lt.u32.totalorder %s1118_s18, %s1426_s13 }
 0xad9   :  { %p1124_p1 = pnand %p1122_p0, %p1119_p13 }
 0xadb   :  { %1127 = shalt.err (!%p1124_p1)
}
 0xadc   :  { %866 = dma.vmem_to_hbm [thread:$0]  %s864_s14, 16, %s1426_s13, [#allocation7]  }
 0xadd   :  { %1130 = dma.done.wait [#allocation5], 128  }
 0xade   :  { %1131 = vsyncadd [#allocation5], 4294967168 }
 0xadf   :  { %1132 = dma.done.wait [#allocation7], 16  }
 0xae0   :  { %1133 = vsyncadd [#allocation7], 4294967280 }
 0xae1   :  { %873 = vsyncpa [#allocation5], 1 }
 0xae2   :  { %874 = vsyncpa [#allocation7], 1 }
 0xae3   :  { %875 = vsyncmov [#allocation3] }
 0xae6   :  { %s876_s0 = vpop.sfrf %875 }
 0xae7   :  { %p906_p2 = scmp.ne.s32.totalorder %s876_s0, 0 }
 0xae9   :  { %880 = shalt.err (%p906_p2)  }

</bundles_post_ra>
